<compile_context>
chip_gen: v7x
topology: tpu7x:2x2x1
jax: 0.10.0
libtpu: 0.0.40
codegen_flags: <defaults>
</compile_context>

<pallas_src>
import functools

import jax
import jax.numpy as jnp
import numpy as np
from jax.experimental import pallas as pl
from jax.experimental.pallas import tpu as pltpu


def _cb_loss_kernel(logits_ref, labels_ref, cls_w_ref, out_ref, acc_ref, *,
                    loss_type, inv_denom):
    i = pl.program_id(0)

    @pl.when(i == 0)
    def _():
        acc_ref[...] = jnp.zeros_like(acc_ref)

    x = logits_ref[...].astype(jnp.float32)            # (C, T)  lane-dense in T
    labels = labels_ref[...]                           # (1, T)  int32
    c, t = x.shape

    # one-hot along the class (sublane) axis; padded samples carry label -1 -> all-zero
    class_ids = jax.lax.broadcasted_iota(jnp.int32, (c, t), 0)
    y = (class_ids == labels).astype(jnp.float32)      # (C, T)

    # per-sample weight = class_weight[label], broadcast over classes
    cls_w = cls_w_ref[...].astype(jnp.float32)         # (C, 1)
    sample_w = jnp.sum(cls_w * y, axis=0, keepdims=True)   # (1, T); 0 for padded cols

    if loss_type == "sigmoid":
        # numerically-stable binary_cross_entropy_with_logits
        elem = jnp.maximum(x, 0.0) - x * y + jnp.log1p(jnp.exp(-jnp.abs(x)))
    elif loss_type == "softmax":
        # log-softmax formulation: one exp + one log per element + one log per sample
        m = jnp.max(x, axis=0, keepdims=True)           # (1, T)
        z = x - m
        e = jnp.exp(z)                                  # (C, T)
        s = jnp.sum(e, axis=0, keepdims=True)           # (1, T)
        log_s = jnp.log(s)                              # (1, T)
        logp = jnp.maximum(z - log_s, -100.0)                             # log(p)
        log1mp = jnp.maximum(jnp.log(jnp.maximum(s - e, 0.0)) - log_s,    # log(1-p)
                             -100.0)
        elem = -(y * logp + (1.0 - y) * log1mp)
    else:
        raise ValueError("loss_type must be sigmoid or softmax")

    weighted = sample_w * elem                          # (C, T); padded cols -> 0
    acc_ref[...] += jnp.sum(weighted, axis=0, keepdims=True)   # (1, T) lane partials

    @pl.when(i == pl.num_programs(0) - 1)
    def _():
        out_ref[0, 0] = jnp.sum(acc_ref[...]) * inv_denom


def _choose_tile_n(n, c, logits_itemsize, vmem_budget_bytes=8 << 20,
                   max_tile=32768):
    """Pick a lane tile (multiple of 128) so double-buffered inputs fit comfortably
    in the smallest scoped-VMEM budget across v5e/v6e/v7x."""
    per_lane = 2 * (c * logits_itemsize + 4) + 4   # 2x (logits + labels) + acc scratch
    t = (vmem_budget_bytes // per_lane) // 128 * 128
    t = max(128, min(int(t), max_tile))
    n_pad_min = ((n + 127) // 128) * 128
    return min(t, n_pad_min)


def class_balanced_loss(logits, labels, gamma, n_samples_per_classes,
                        loss_type="sigmoid", tile_n=None):
    """Pallas implementation of ClassBalancedLoss.forward. logits: (N, C)."""
    n, c = logits.shape
    assert c == len(n_samples_per_classes)

    # class-weight precompute (plain numpy, as in the PyTorch module)
    effective_nums = 1.0 - np.power(gamma, np.asarray(n_samples_per_classes,
                                                      dtype=np.float64))
    weights = (1.0 - gamma) / effective_nums
    weights = weights / np.sum(weights) * c
    cls_w = jnp.asarray(weights, dtype=jnp.float32).reshape(c, 1)

    if tile_n is None:
        tile_n = _choose_tile_n(n, c, logits.dtype.itemsize)
    assert tile_n % 128 == 0
    n_pad = ((n + tile_n - 1) // tile_n) * tile_n
    num_tiles = n_pad // tile_n

    # lane-dense layout plumbing: (N, C) -> (C, N), pad batch with 0-logits / -1 labels
    logits_t = jnp.transpose(logits)                       # (C, N)
    labels_row = labels.astype(jnp.int32).reshape(1, n)    # (1, N)
    if n_pad != n:
        logits_t = jnp.pad(logits_t, ((0, 0), (0, n_pad - n)))
        labels_row = jnp.pad(labels_row, ((0, 0), (0, n_pad - n)),
                             constant_values=-1)

    kernel = functools.partial(_cb_loss_kernel, loss_type=loss_type,
                               inv_denom=1.0 / float(n * c))

    bytes_accessed = (logits_t.size * logits_t.dtype.itemsize
                      + labels_row.size * 4 + c * 4 + 4)
    transcendentals = 2 * n_pad * c           # ~exp + log(1p) per element, both paths
    cost = pl.CostEstimate(flops=10 * n_pad * c,
                           transcendentals=transcendentals,
                           bytes_accessed=bytes_accessed)

    out = pl.pallas_call(
        kernel,
        out_shape=jax.ShapeDtypeStruct((1, 1), jnp.float32),
        grid_spec=pltpu.PrefetchScalarGridSpec(
            num_scalar_prefetch=0,
            grid=(num_tiles,),
            in_specs=[
                pl.BlockSpec((c, tile_n), lambda i: (0, i)),     # logits (C, T)
                pl.BlockSpec((1, tile_n), lambda i: (0, i)),     # labels (1, T)
                pl.BlockSpec((c, 1), lambda i: (0, 0)),          # class weights
            ],
            out_specs=pl.BlockSpec((1, 1), lambda i: (0, 0),
                                   memory_space=pltpu.MemorySpace.SMEM),
            scratch_shapes=[pltpu.VMEM((1, tile_n), jnp.float32)],
        ),
        compiler_params=pltpu.CompilerParams(
            dimension_semantics=("arbitrary",),       # accumulator carried across tiles
            vmem_limit_bytes=32 * 1024 * 1024,
        ),
        cost_estimate=cost,
    )(logits_t, labels_row, cls_w)
    return out[0, 0]


def _reference(logits, labels, gamma, n_samples_per_classes, loss_type="sigmoid"):
    # pure-JAX reference mirroring the PyTorch forward (with BCE's -100 clamp)
    c = len(n_samples_per_classes)
    effective_nums = 1.0 - np.power(gamma, np.asarray(n_samples_per_classes,
                                                      dtype=np.float64))
    w = (1.0 - gamma) / effective_nums
    w = w / np.sum(w) * c
    w = jnp.asarray(w, dtype=jnp.float32)[None, :]
    y = jax.nn.one_hot(labels.astype(jnp.int32), c, dtype=jnp.float32)
    sample_w = jnp.sum(w * y, axis=1, keepdims=True)
    x = logits.astype(jnp.float32)
    if loss_type == "sigmoid":
        elem = jnp.maximum(x, 0.0) - x * y + jnp.log1p(jnp.exp(-jnp.abs(x)))
    else:
        p = jax.nn.softmax(x, axis=1)
        logp = jnp.maximum(jnp.log(p), -100.0)
        log1mp = jnp.maximum(jnp.log1p(-p), -100.0)
        elem = -(y * logp + (1.0 - y) * log1mp)
    return jnp.mean(sample_w * elem)


if __name__ == "__main__":
    key = jax.random.PRNGKey(0)
    k1, k2, k3, k4 = jax.random.split(key, 4)

    gamma = 0.9
    n_samples_per_classes = [50, 10, 30, 5]
    C = 4

    # small case, sigmoid + softmax paths
    N = 8
    logits = jax.random.normal(k1, (N, C), dtype=jnp.float32)
    labels = jax.random.randint(k2, (N,), 0, C, dtype=jnp.int32)

    out_sig = jax.block_until_ready(
        class_balanced_loss(logits, labels, gamma, n_samples_per_classes, "sigmoid"))
    ref_sig = _reference(logits, labels, gamma, n_samples_per_classes, "sigmoid")
    assert jnp.allclose(out_sig, ref_sig, rtol=1e-5, atol=1e-5), (out_sig, ref_sig)

    out_soft = jax.block_until_ready(
        class_balanced_loss(logits, labels, gamma, n_samples_per_classes, "softmax"))
    ref_soft = _reference(logits, labels, gamma, n_samples_per_classes, "softmax")
    assert jnp.allclose(out_soft, ref_soft, rtol=1e-4, atol=1e-4), (out_soft, ref_soft)

    # multi-tile + tail-masking check (N not a multiple of the tile)
    N2 = 300
    logits2 = jax.random.normal(k3, (N2, C), dtype=jnp.float32)
    labels2 = jax.random.randint(k4, (N2,), 0, C, dtype=jnp.int32)
    out2 = jax.block_until_ready(
        class_balanced_loss(logits2, labels2, gamma, n_samples_per_classes,
                            "sigmoid", tile_n=128))
    ref2 = _reference(logits2, labels2, gamma, n_samples_per_classes, "sigmoid")
    assert jnp.allclose(out2, ref2, rtol=1e-4, atol=1e-4), (out2, ref2)

    # bf16 ingest (kernel accumulates in f32)
    out_bf = jax.block_until_ready(
        class_balanced_loss(logits.astype(jnp.bfloat16), labels, gamma,
                            n_samples_per_classes, "sigmoid"))
    ref_bf = _reference(logits.astype(jnp.bfloat16).astype(jnp.float32), labels,
                        gamma, n_samples_per_classes, "sigmoid")
    assert jnp.allclose(out_bf, ref_bf, rtol=1e-4, atol=1e-4), (out_bf, ref_bf)

    print("KERNEL_OK")
</pallas_src>

<mosaic_0001>
module attributes {stable_mosaic.version = 11 : i64} {
  func.func @_cb_loss_kernel(%arg0: i32, %arg1: memref<4x128xf32, #tpu.memory_space<vmem>>, %arg2: memref<1x128xi32, #tpu.memory_space<vmem>>, %arg3: memref<4x1xf32, #tpu.memory_space<vmem>>, %arg4: memref<1x1xf32, #tpu.memory_space<smem>>, %arg5: memref<1x128xf32, #tpu.memory_space<vmem>>) attributes {dimension_semantics = [#tpu.dimension_semantics<arbitrary>], iteration_bounds = array<i64: 1>, scalar_prefetch = 0 : i64, scratch_operands = 1 : i64, tpu.core_type = #tpu.core_type<tc>, window_params = [{transform_indices = @transform_0, window_bounds = array<i64: 4, 128>}, {transform_indices = @transform_1, window_bounds = array<i64: 1, 128>}, {pipeline_mode = #tpu.pipeline_mode<synchronous>, transform_indices = @transform_2, window_bounds = array<i64: 4, 1>}, {transform_indices = @transform_3, window_bounds = array<i64: 1, 1>}]} {
    %c0_i32 = arith.constant 0 : i32
    %0 = arith.cmpi eq, %arg0, %c0_i32 : i32
    %1 = arith.extui %0 : i1 to i32
    %c0_i32_0 = arith.constant 0 : i32
    %2 = arith.cmpi ne, %1, %c0_i32_0 : i32
    scf.if %2 {
      %cst_15 = arith.constant 0.000000e+00 : f32
      %35 = vector.broadcast %cst_15 : f32 to vector<1x128xf32>
      %c0_16 = arith.constant 0 : index
      %c0_17 = arith.constant 0 : index
      %36 = vector.load %arg5[%c0_16, %c0_17] : memref<1x128xf32, #tpu.memory_space<vmem>>, vector<1x128xf32>
      tpu.vector_store %arg5[%c0_16, %c0_17], %35 {strides = array<i32>} : memref<1x128xf32, #tpu.memory_space<vmem>>, vector<1x128xf32>,
    } else {
    }
    %c0 = arith.constant 0 : index
    %c0_1 = arith.constant 0 : index
    %3 = vector.load %arg1[%c0, %c0_1] : memref<4x128xf32, #tpu.memory_space<vmem>>, vector<4x128xf32>
    %c0_2 = arith.constant 0 : index
    %c0_3 = arith.constant 0 : index
    %4 = vector.load %arg2[%c0_2, %c0_3] : memref<1x128xi32, #tpu.memory_space<vmem>>, vector<1x128xi32>
    %5 = tpu.iota {dimensions = array<i32: 0>} : vector<4x128xi32>
    %6 = vector.broadcast %4 : vector<1x128xi32> to vector<4x128xi32>
    %7 = arith.cmpi eq, %5, %6 : vector<4x128xi32>
    %8 = arith.extui %7 : vector<4x128xi1> to vector<4x128xi32>
    %9 = arith.sitofp %8 : vector<4x128xi32> to vector<4x128xf32>
    %c0_4 = arith.constant 0 : index
    %c0_5 = arith.constant 0 : index
    %10 = vector.load %arg3[%c0_4, %c0_5] : memref<4x1xf32, #tpu.memory_space<vmem>>, vector<4x1xf32>
    %11 = vector.broadcast %10 : vector<4x1xf32> to vector<4x128xf32>
    %12 = arith.mulf %11, %9 : vector<4x128xf32>
    %cst = arith.constant dense<0.000000e+00> : vector<128xf32>
    %13 = vector.multi_reduction <add>, %12, %cst [0] : vector<4x128xf32> to vector<128xf32>
    %14 = vector.shape_cast %13 : vector<128xf32> to vector<1x128xf32>
    %cst_6 = arith.constant 0.000000e+00 : f32
    %15 = vector.broadcast %cst_6 : f32 to vector<4x128xf32>
    %16 = arith.maximumf %3, %15 : vector<4x128xf32>
    %17 = arith.mulf %3, %9 : vector<4x128xf32>
    %18 = arith.subf %16, %17 : vector<4x128xf32>
    %19 = math.absf %3 : vector<4x128xf32>
    %cst_7 = arith.constant 0.000000e+00 : f32
    %20 = vector.broadcast %cst_7 : f32 to vector<4x128xf32>
    %21 = arith.subf %20, %19 : vector<4x128xf32>
    %22 = math.exp %21 : vector<4x128xf32>
    %23 = math.log1p %22 : vector<4x128xf32>
    %24 = arith.addf %18, %23 : vector<4x128xf32>
    %25 = vector.broadcast %14 : vector<1x128xf32> to vector<4x128xf32>
    %26 = arith.mulf %25, %24 : vector<4x128xf32>
    %c0_8 = arith.constant 0 : index
    %c0_9 = arith.constant 0 : index
    %27 = vector.load %arg5[%c0_8, %c0_9] : memref<1x128xf32, #tpu.memory_space<vmem>>, vector<1x128xf32>
    %cst_10 = arith.constant dense<0.000000e+00> : vector<128xf32>
    %28 = vector.multi_reduction <add>, %26, %cst_10 [0] : vector<4x128xf32> to vector<128xf32>
    %29 = vector.shape_cast %28 : vector<128xf32> to vector<1x128xf32>
    %30 = arith.addf %27, %29 : vector<1x128xf32>
    %c0_11 = arith.constant 0 : index
    %c0_12 = arith.constant 0 : index
    %31 = vector.load %arg5[%c0_11, %c0_12] : memref<1x128xf32, #tpu.memory_space<vmem>>, vector<1x128xf32>
    tpu.vector_store %arg5[%c0_11, %c0_12], %30 {strides = array<i32>} : memref<1x128xf32, #tpu.memory_space<vmem>>, vector<1x128xf32>,
    %c0_i32_13 = arith.constant 0 : i32
    %32 = arith.cmpi eq, %arg0, %c0_i32_13 : i32
    %33 = arith.extui %32 : i1 to i32
    %c0_i32_14 = arith.constant 0 : i32
    %34 = arith.cmpi ne, %33, %c0_i32_14 : i32
    scf.if %34 {
      %c0_15 = arith.constant 0 : index
      %c0_16 = arith.constant 0 : index
      %35 = vector.load %arg5[%c0_15, %c0_16] : memref<1x128xf32, #tpu.memory_space<vmem>>, vector<1x128xf32>
      %36 = vector.shape_cast %35 : vector<1x128xf32> to vector<1x1x128xf32>
      %cst_17 = arith.constant dense<0.000000e+00> : vector<1xf32>
      %37 = vector.multi_reduction <add>, %36, %cst_17 [1, 2] : vector<1x1x128xf32> to vector<1xf32>
      %38 = vector.shape_cast %37 : vector<1xf32> to vector<1x1x1xf32>
      %39 = vector.extract %38[0, 0, 0] : f32 from vector<1x1x1xf32>
      %cst_18 = arith.constant 3.125000e-02 : f32
      %40 = arith.mulf %39, %cst_18 : f32
      %c0_19 = arith.constant 0 : index
      %c0_20 = arith.constant 0 : index
      %41 = memref.load %arg4[%c0_19, %c0_20] : memref<1x1xf32, #tpu.memory_space<smem>>
      memref.store %40, %arg4[%c0_19, %c0_20] : memref<1x1xf32, #tpu.memory_space<smem>>
    } else {
    }
    return
  }
  func.func @transform_0(%arg0: i32) -> (i32, i32) {
    %c0_i32 = arith.constant 0 : i32
    %c0_i32_0 = arith.constant 0 : i32
    return %c0_i32, %arg0 : i32, i32
  }
  func.func @transform_1(%arg0: i32) -> (i32, i32) {
    %c0_i32 = arith.constant 0 : i32
    %c0_i32_0 = arith.constant 0 : i32
    return %c0_i32, %arg0 : i32, i32
  }
  func.func @transform_2(%arg0: i32) -> (i32, i32) {
    %c0_i32 = arith.constant 0 : i32
    %c0_i32_0 = arith.constant 0 : i32
    %c0_i32_1 = arith.constant 0 : i32
    return %c0_i32, %c0_i32_0 : i32, i32
  }
  func.func @transform_3(%arg0: i32) -> (i32, i32) {
    %c0_i32 = arith.constant 0 : i32
    %c0_i32_0 = arith.constant 0 : i32
    %c0_i32_1 = arith.constant 0 : i32
    return %c0_i32, %c0_i32_0 : i32, i32
  }
}

</mosaic_0001>

<bundles_post_ra>
// kernel: tpu_custom_call.1
= control target key start
LH: loop header
LB: loop body
LE: loop exit
PB: predicated region body
PF: predicated region fallthrough
CT: control target
= control target key end

     0   :  { %v129_v1 = vmov 0   ;;  %v130_v2 = vmov 0.0   ;;  %s175_s0 = inlined_call_operand.vmem [shape: f32[4,128], index: 0, kind: input, shape index: {}]   ;;  %s176_s1 = inlined_call_operand.vmem [shape: s32[1,128], index: 1, kind: input, shape index: {}]   ;;  %s177_s2 = inlined_call_operand.vmem [shape: f32[4,1], index: 2, kind: input, shape index: {}]   ;;  %s178_s3 = inlined_call_operand.hbm [shape: f32[1,1], index: 3, kind: output, shape index: {}]  }
   0x1   :  { %v31_v0 = vld [vmem:[%s177_s2] sm:$0xf]  ;;  %112 = vset.pattern.permute.xlu0 %v129_v1  ;;  %19 = vst [vmem:[#allocation2] sm:$0x1] %v130_v2 }
   0x2   :  { %8 = vsyncpa [#allocation4], 0  ;;  %34 = vperm.xlu0 %112, %v31_v0   ;;  %v20_v3 = vld [vmem:[%s175_s0] sm:$0xf]  ;;  %v22_v8 = vlaneseq  ;;  %vm38_vm1 = vcmask 1043456   ;;  %vm78_vm3 = vcmask 1040384  }
   0x3   :  { %v49_v4 = vand.u32 2147483647, %v20_v3  ;;  %v105_v11 = vld [vmem:[%s176_s1] ss:$0 sm:$0xff]  ;;  %v46_v21 = vmax.f32 %v20_v3, 0.0  ;;  %s117_s19 = scalar_lea.hbm %s178_s3, 16 }
   0x4   :  { %v23_v10 = vshrl.u32 %v22_v8, 7  ;;  %p118_p0 = scmp.ne.s32.totalorder %s178_s3, %s117_s19  ;;  %p121_p1 = scmp.lt.u32.totalorder %s117_s19, %s178_s3 }
   0x5   :  { %v50_v5 = vsub.f32 0.0, %v49_v4 }
   0x6   :  { %vm28_vm0 = vcmp.eq.s32.totalorder %v23_v10, %v105_v11  ;;  %p123_p2 = pnand %p121_p1, %p118_p0 }
   0x7   :  { %v51_v6 = vmul.f32 1.442695, %v50_v5  ;;  %v106_v13 = vsel %vm28_vm0, 1.0, %v130_v2 }
   0x8   :  { %v47_v22 = vmul.f32 %v106_v13, %v20_v3  ;;  %v64_v40 = vld [vmem:[#allocation2] sm:$0x1] }
   0x9   :  { %113 = vpow2.f32 %v51_v6 }
   0xa   :  { %v48_v27 = vsub.f32 %v46_v21, %v47_v22 }
  0x13   :  { %v114_v7 = vpop.eup %113 }
  0x14   :  { %v53_v9 = vadd.f32 1.0, %v114_v7  ;;  %v56_v12 = vmul.f32 -0.5, %v114_v7  ;;  %v59_v18 = vand.u32 2147483647, %v114_v7 }
  0x16   :  { %115 = vlog2.f32 %v53_v9  ;;  %v57_v16 = vadd.f32 1.0, %v56_v12  ;;  %vm60_vm2 = vcmp.lt.f32.partialorder %v59_v18, 0.0004427343 }
  0x18   :  { %v58_v24 = vmul.f32 %v114_v7, %v57_v16 }
  0x20   :  { %v116_v17 = vpop.eup %115 }
  0x21   :  { %v55_v23 = vmul.f32 0.6931472, %v116_v17 }
  0x23   :  { %v61_v28 = vsel %vm60_vm2, %v58_v24, %v55_v23 }
  0x24   :  { %v62_v31 = vadd.f32 %v61_v28, %v48_v27 }
  0x81   :  { %v35_v14 = vpop.permute.xlu0 %34 }
  0x82   :  { %v37_v15 = vmul.f32 %v106_v13, %v35_v14 }
  0x84   :  { %v39_v19 = vsel %vm38_vm1, %v37_v15, 0.0 }
  0x85   :  { %v40_v20 = vrot.slane %v39_v19, 4 }
  0x87   :  { %v41_v25 = vadd.f32 %v40_v20, %v39_v19 }
  0x89   :  { %v42_v26 = vrot.slane %v41_v25, 2 }
  0x8b   :  { %v43_v29 = vadd.f32 %v42_v26, %v41_v25 }
  0x8d   :  { %v44_v30 = vrot.slane %v43_v29, 1 }
  0x8f   :  { %v45_v32 = vadd.f32 %v44_v30, %v43_v29 }
  0x91   :  { %v63_v33 = vmul.f32 %v62_v31, %v45_v32 }
  0x93   :  { %v65_v34 = vsel %vm38_vm1, %v63_v33, 0.0 }
  0x94   :  { %v66_v35 = vrot.slane %v65_v34, 4 }
  0x96   :  { %v67_v36 = vadd.f32 %v66_v35, %v65_v34 }
  0x98   :  { %v68_v37 = vrot.slane %v67_v36, 2 }
  0x9a   :  { %v69_v38 = vadd.f32 %v68_v37, %v67_v36 }
  0x9c   :  { %v70_v39 = vrot.slane %v69_v38, 1 }
  0x9e   :  { %v71_v41 = vadd.f32 %v70_v39, %v69_v38 }
  0xa0   :  { %v72_v42 = vadd.f32 %v71_v41, %v64_v40 }
  0xa2   :  { %73 = vst [vmem:[#allocation2] sm:$0x1] %v72_v42 }
  0xa9   :  { %v77_v43 = vld [vmem:[#allocation2] sm:$0x1] }
  0xaa   :  { %v79_v44 = vsel %vm78_vm3, %v77_v43, 0.0 }
  0xab   :  { %80 = vadd.xlane.f32.xlu0 %v79_v44 }
 0x138   :  { %v81_v45 = vpop.xlane.xlu0 %80 }
 0x139   :  { %v82_v46 = vrot.slane %v81_v45, 4 }
 0x13b   :  { %v83_v47 = vadd.f32 %v82_v46, %v81_v45 }
 0x13d   :  { %v84_v48 = vrot.slane %v83_v47, 2 }
 0x13f   :  { %v85_v49 = vadd.f32 %v84_v48, %v83_v47 }
 0x141   :  { %v86_v50 = vrot.slane %v85_v49, 1 }
 0x143   :  { %v87_v51 = vadd.f32 %v86_v50, %v85_v49 }
 0x145   :  { %107 = vpush %v87_v51 }
 0x176   :  { %s108_s0 = spop %107 }
 0x177   :  { %s89_s1 = smul.f32 0.03125, %s108_s0 }
 0x179   :  { %91 = sst [smem:[#allocation3]] %s89_s1 }
 0x17a   :  { %126 = shalt.err (!%p123_p2)
}
 0x17b   :  { %s131_s24 = smov [#allocation3]  }
 0x17c   :  { %99 = dma.smem_to_hbm %s131_s24, 16, %s178_s3, [#allocation4]  }
 0x17d   :  { %127 = dma.done.wait [#allocation4], 16  }
 0x17e   :  { %128 = vsyncadd [#allocation4], 4294967280 }
 0x17f   :  { %103 = sfence }
 0x180   :  { %104 = vsyncpa [#allocation4], 1 }

</bundles_post_ra>
